<compile_context>
chip_gen: v7x
topology: tpu7x:2x2x1
jax: 0.10.0
libtpu: 0.0.40
codegen_flags: <defaults>
</compile_context>

<pallas_src>
import jax
import jax.numpy as jnp
import numpy as np
from jax.experimental import pallas as pl
from jax.experimental.pallas import tpu as pltpu


# -----------------------------------------------------------------------------
# Kernel: per-tile DMA gather from the HBM table + fused 2-layer highway.
# -----------------------------------------------------------------------------
def _embed_highway_kernel(ids_ref, table_hbm, whwy_ref, bhwy_ref, out_ref,
                          xbuf, sem):
    # ids_ref:   (BSp,)      int32  SMEM (scalar prefetch) -- all token ids
    # table_hbm: (V, H)      f32    HBM (pl.ANY) -- proj-folded embedding table
    # whwy_ref:  (L, H, 2H)  f32    VMEM -- per-layer [W_transform^T | W_gate^T]
    # bhwy_ref:  (L, 1, 2H)  f32    VMEM -- per-layer [b_transform | b_gate]
    # out_ref:   (TM, H)     f32    VMEM output tile
    # xbuf:      (TM, H)     f32    VMEM scratch -- gathered embedding rows
    # sem:       DMA semaphore
    TM, H = out_ref.shape
    L = whwy_ref.shape[0]
    base = pl.program_id(0) * TM

    # DMA-gather this tile's TM rows from the HBM table into VMEM.
    # TODO(synk): at real sizes, also issue the *next* tile's gather here
    # (manual double-buffering) so gather latency hides under the highway math.
    for r in range(TM):
        tok = ids_ref[base + r]
        pltpu.make_async_copy(
            table_hbm.at[pl.ds(tok, 1), :],   # (1, H) row in HBM
            xbuf.at[pl.ds(r, 1), :],          # (1, H) row of the VMEM tile
            sem,
        ).start()
    for _ in range(TM):
        # Same-shaped descriptor; each wait retires one row copy.
        pltpu.make_async_copy(
            table_hbm.at[pl.ds(0, 1), :], xbuf.at[pl.ds(0, 1), :], sem,
        ).wait()

    # Projection already folded into the table; dropout is identity in eval.
    x = xbuf[...]                                                   # (TM, H)

    # Highway encoder: unrolled layers; transform+gate fused into one matmul;
    # one sigmoid over the contiguous (TM, 2H) gates block, then vreg-aligned
    # slices at the H=128 boundary.
    for l in range(L):
        gates = (jnp.dot(x, whwy_ref[l], preferred_element_type=jnp.float32)
                 + bhwy_ref[l])                                     # (TM, 2H)
        g = jax.nn.sigmoid(gates)
        h = g[:, :H]
        z = g[:, H:]
        x = z * h + (1.0 - z) * x

    out_ref[...] = x.astype(out_ref.dtype)


def embedding_forward_pallas(ids_bs, word_vectors, w_proj, w_hwy, b_hwy, *, tm=8):
    """ids_bs: (B, S) int token ids.  Returns (B, S, H) float32.

    tm = tokens per grid step.  Use 256-512 at real SQuAD sizes so each highway
    matmul fills the 128/256-row MXU; 8 here keeps the toy problem on a
    multi-step grid that still exercises the pipeline.
    """
    B, S = ids_bs.shape
    V, Dw = word_vectors.shape
    H = w_proj.shape[1]
    L = w_hwy.shape[0]

    # Fold the bias-free projection into the table (exact only because proj has
    # no bias and eval-mode dropout is the identity).
    # TODO(synk): store table_eff in bfloat16 on v6e/v7x to halve gather bytes.
    table_eff = (word_vectors @ w_proj).astype(jnp.float32)        # (V, H)

    BS = B * S
    n_tiles = pl.cdiv(BS, tm)
    BSp = n_tiles * tm

    # Clamp ids (matches jnp.take's clipped OOB behavior) and pad the tail.
    ids = jnp.clip(ids_bs.reshape(BS).astype(jnp.int32), 0, V - 1)
    ids = jnp.pad(ids, (0, BSp - BS))

    out = pl.pallas_call(
        _embed_highway_kernel,
        out_shape=jax.ShapeDtypeStruct((BSp, H), jnp.float32),
        grid_spec=pltpu.PrefetchScalarGridSpec(
            num_scalar_prefetch=1,                    # ids -> SMEM
            grid=(n_tiles,),
            in_specs=[
                pl.BlockSpec(memory_space=pl.ANY),    # table stays in HBM; DMA-gathered
                # Constant-index weight/bias blocks.  At real sizes add
                # pipeline_mode=pl.Buffered(1) to these to drop the redundant
                # double buffer and save VMEM headroom.
                pl.BlockSpec((L, H, 2 * H), lambda i, ids: (0, 0, 0)),
                pl.BlockSpec((L, 1, 2 * H), lambda i, ids: (0, 0, 0)),
            ],
            out_specs=pl.BlockSpec((tm, H), lambda i, ids: (i, 0)),
            scratch_shapes=[
                pltpu.VMEM((tm, H), jnp.float32),     # gathered token tile
                pltpu.SemaphoreType.DMA(()),          # gather-completion semaphore
            ],
        ),
        compiler_params=pltpu.CompilerParams(
            # Token tiles are independent -> shard across TensorCores on v7x.
            dimension_semantics=("parallel",)),
    )(ids, table_eff, w_hwy, b_hwy)

    return out[:BS].reshape(B, S, H)


# -----------------------------------------------------------------------------
# Pure-JAX reference (original unfused math) for verification.
# -----------------------------------------------------------------------------
def embedding_forward_ref(ids_bs, word_vectors, w_proj, w_hwy, b_hwy):
    H = w_proj.shape[1]
    emb = jnp.take(word_vectors, ids_bs, axis=0)          # (B, S, Dw)
    x = emb @ w_proj                                      # (B, S, H)
    for l in range(w_hwy.shape[0]):
        gates = x @ w_hwy[l] + b_hwy[l]
        h = jax.nn.sigmoid(gates[..., :H])
        z = jax.nn.sigmoid(gates[..., H:])
        x = z * h + (1.0 - z) * x
    return x


# -----------------------------------------------------------------------------
# Deterministic parameter init (PyTorch nn.Linear-style uniform(-1/sqrt(in), .)).
# -----------------------------------------------------------------------------
def init_params(key, vocab_size, word_dim, hidden_size, num_hwy_layers):
    key, kv = jax.random.split(key)
    word_vectors = jax.random.normal(kv, (vocab_size, word_dim), jnp.float32)

    # proj: Linear(word_dim, hidden_size, bias=False); stored transposed (Dw, H).
    key, kp = jax.random.split(key)
    bp = 1.0 / np.sqrt(word_dim)
    w_proj = jax.random.uniform(kp, (word_dim, hidden_size), jnp.float32, -bp, bp)

    # highway layers: fuse transform & gate Linears -> (H, 2H) weight, (1, 2H) bias.
    bh = 1.0 / np.sqrt(hidden_size)
    w_layers, b_layers = [], []
    for _ in range(num_hwy_layers):
        key, k1, k2, k3, k4 = jax.random.split(key, 5)
        w_t = jax.random.uniform(k1, (hidden_size, hidden_size), jnp.float32, -bh, bh)
        b_t = jax.random.uniform(k2, (hidden_size,), jnp.float32, -bh, bh)
        w_g = jax.random.uniform(k3, (hidden_size, hidden_size), jnp.float32, -bh, bh)
        b_g = jax.random.uniform(k4, (hidden_size,), jnp.float32, -bh, bh)
        # pre-transpose for (TM, H) @ (H, 2H); concat [transform | gate]
        w_layers.append(jnp.concatenate([w_t.T, w_g.T], axis=1))
        b_layers.append(jnp.concatenate([b_t, b_g])[None, :])
    w_hwy = jnp.stack(w_layers)                           # (L, H, 2H)
    b_hwy = jnp.stack(b_layers)                           # (L, 1, 2H)
    return word_vectors, w_proj, w_hwy, b_hwy


# -----------------------------------------------------------------------------
# Main
# -----------------------------------------------------------------------------
if __name__ == "__main__":
    B, S = 2, 8                 # batch, sentence length
    VOCAB, WORD_DIM = 128, 64   # pre-trained word-vector table
    HIDDEN = 128                # lane-dense hidden size
    NUM_HWY_LAYERS = 2

    key = jax.random.PRNGKey(0)
    word_vectors, w_proj, w_hwy, b_hwy = init_params(
        key, VOCAB, WORD_DIM, HIDDEN, NUM_HWY_LAYERS)

    key, kx = jax.random.split(key)
    x_ids = jax.random.randint(kx, (B, S), 0, VOCAB, dtype=jnp.int32)

    out = embedding_forward_pallas(x_ids, word_vectors, w_proj, w_hwy, b_hwy, tm=8)
    out = jax.block_until_ready(out)

    out_ref = jax.block_until_ready(
        embedding_forward_ref(x_ids, word_vectors, w_proj, w_hwy, b_hwy))

    assert out.shape == (B, S, HIDDEN)
    np.testing.assert_allclose(np.asarray(out), np.asarray(out_ref),
                               rtol=1e-5, atol=1e-5)

    print("KERNEL_OK")
</pallas_src>

<mosaic_0001>
module attributes {stable_mosaic.version = 11 : i64} {
  func.func @_embed_highway_kernel(%arg0: i32, %arg1: memref<16xi32, #tpu.memory_space<smem>>, %arg2: memref<128x128xf32, #tpu.memory_space<any>>, %arg3: memref<2x128x256xf32, #tpu.memory_space<vmem>>, %arg4: memref<2x1x256xf32, #tpu.memory_space<vmem>>, %arg5: memref<8x128xf32, #tpu.memory_space<vmem>>, %arg6: memref<8x128xf32, #tpu.memory_space<vmem>>, %arg7: memref<!tpu.dma_semaphore, #tpu.memory_space<semaphore_mem>>) attributes {dimension_semantics = [#tpu.dimension_semantics<parallel>], iteration_bounds = array<i64: 2>, scalar_prefetch = 1 : i64, scratch_operands = 2 : i64, tpu.core_type = #tpu.core_type<tc>, window_params = [{}, {pipeline_mode = #tpu.pipeline_mode<synchronous>, transform_indices = @transform_1, window_bounds = array<i64: 2, 128, 256>}, {pipeline_mode = #tpu.pipeline_mode<synchronous>, transform_indices = @transform_2, window_bounds = array<i64: 2, 1, 256>}, {transform_indices = @transform_3, window_bounds = array<i64: 8, 128>}]} {
    %c8_i32 = arith.constant 8 : i32
    %0 = arith.muli %arg0, %c8_i32 : i32
    %c0_i32 = arith.constant 0 : i32
    %1 = arith.addi %0, %c0_i32 : i32
    %2 = arith.index_cast %1 : i32 to index
    %3 = memref.load %arg1[%2] : memref<16xi32, #tpu.memory_space<smem>>
    %c0_i32_0 = arith.constant 0 : i32
    %4 = tpu.memref_slice %arg2[%3, %c0_i32_0] : memref<128x128xf32, #tpu.memory_space<any>> -> memref<1x128xf32, #tpu.memory_space<any>>
    %c0_i32_1 = arith.constant 0 : i32
    %c0_i32_2 = arith.constant 0 : i32
    %5 = tpu.memref_slice %arg6[%c0_i32_1, %c0_i32_2] : memref<8x128xf32, #tpu.memory_space<vmem>> -> memref<1x128xf32, #tpu.memory_space<vmem>>
    tpu.enqueue_dma source(%4 : memref<1x128xf32, #tpu.memory_space<any>>) target(%5 : memref<1x128xf32, #tpu.memory_space<vmem>>) target_semaphore(%arg7 : memref<!tpu.dma_semaphore, #tpu.memory_space<semaphore_mem>>)
    %c1_i32 = arith.constant 1 : i32
    %6 = arith.addi %0, %c1_i32 : i32
    %7 = arith.index_cast %6 : i32 to index
    %8 = memref.load %arg1[%7] : memref<16xi32, #tpu.memory_space<smem>>
    %c0_i32_3 = arith.constant 0 : i32
    %9 = tpu.memref_slice %arg2[%8, %c0_i32_3] : memref<128x128xf32, #tpu.memory_space<any>> -> memref<1x128xf32, #tpu.memory_space<any>>
    %c1_i32_4 = arith.constant 1 : i32
    %c0_i32_5 = arith.constant 0 : i32
    %10 = tpu.memref_slice %arg6[%c1_i32_4, %c0_i32_5] : memref<8x128xf32, #tpu.memory_space<vmem>> -> memref<1x128xf32, #tpu.memory_space<vmem>>
    tpu.enqueue_dma source(%9 : memref<1x128xf32, #tpu.memory_space<any>>) target(%10 : memref<1x128xf32, #tpu.memory_space<vmem>>) target_semaphore(%arg7 : memref<!tpu.dma_semaphore, #tpu.memory_space<semaphore_mem>>)
    %c2_i32 = arith.constant 2 : i32
    %11 = arith.addi %0, %c2_i32 : i32
    %12 = arith.index_cast %11 : i32 to index
    %13 = memref.load %arg1[%12] : memref<16xi32, #tpu.memory_space<smem>>
    %c0_i32_6 = arith.constant 0 : i32
    %14 = tpu.memref_slice %arg2[%13, %c0_i32_6] : memref<128x128xf32, #tpu.memory_space<any>> -> memref<1x128xf32, #tpu.memory_space<any>>
    %c2_i32_7 = arith.constant 2 : i32
    %c0_i32_8 = arith.constant 0 : i32
    %15 = tpu.memref_slice %arg6[%c2_i32_7, %c0_i32_8] : memref<8x128xf32, #tpu.memory_space<vmem>> -> memref<1x128xf32, #tpu.memory_space<vmem>>
    tpu.enqueue_dma source(%14 : memref<1x128xf32, #tpu.memory_space<any>>) target(%15 : memref<1x128xf32, #tpu.memory_space<vmem>>) target_semaphore(%arg7 : memref<!tpu.dma_semaphore, #tpu.memory_space<semaphore_mem>>)
    %c3_i32 = arith.constant 3 : i32
    %16 = arith.addi %0, %c3_i32 : i32
    %17 = arith.index_cast %16 : i32 to index
    %18 = memref.load %arg1[%17] : memref<16xi32, #tpu.memory_space<smem>>
    %c0_i32_9 = arith.constant 0 : i32
    %19 = tpu.memref_slice %arg2[%18, %c0_i32_9] : memref<128x128xf32, #tpu.memory_space<any>> -> memref<1x128xf32, #tpu.memory_space<any>>
    %c3_i32_10 = arith.constant 3 : i32
    %c0_i32_11 = arith.constant 0 : i32
    %20 = tpu.memref_slice %arg6[%c3_i32_10, %c0_i32_11] : memref<8x128xf32, #tpu.memory_space<vmem>> -> memref<1x128xf32, #tpu.memory_space<vmem>>
    tpu.enqueue_dma source(%19 : memref<1x128xf32, #tpu.memory_space<any>>) target(%20 : memref<1x128xf32, #tpu.memory_space<vmem>>) target_semaphore(%arg7 : memref<!tpu.dma_semaphore, #tpu.memory_space<semaphore_mem>>)
    %c4_i32 = arith.constant 4 : i32
    %21 = arith.addi %0, %c4_i32 : i32
    %22 = arith.index_cast %21 : i32 to index
    %23 = memref.load %arg1[%22] : memref<16xi32, #tpu.memory_space<smem>>
    %c0_i32_12 = arith.constant 0 : i32
    %24 = tpu.memref_slice %arg2[%23, %c0_i32_12] : memref<128x128xf32, #tpu.memory_space<any>> -> memref<1x128xf32, #tpu.memory_space<any>>
    %c4_i32_13 = arith.constant 4 : i32
    %c0_i32_14 = arith.constant 0 : i32
    %25 = tpu.memref_slice %arg6[%c4_i32_13, %c0_i32_14] : memref<8x128xf32, #tpu.memory_space<vmem>> -> memref<1x128xf32, #tpu.memory_space<vmem>>
    tpu.enqueue_dma source(%24 : memref<1x128xf32, #tpu.memory_space<any>>) target(%25 : memref<1x128xf32, #tpu.memory_space<vmem>>) target_semaphore(%arg7 : memref<!tpu.dma_semaphore, #tpu.memory_space<semaphore_mem>>)
    %c5_i32 = arith.constant 5 : i32
    %26 = arith.addi %0, %c5_i32 : i32
    %27 = arith.index_cast %26 : i32 to index
    %28 = memref.load %arg1[%27] : memref<16xi32, #tpu.memory_space<smem>>
    %c0_i32_15 = arith.constant 0 : i32
    %29 = tpu.memref_slice %arg2[%28, %c0_i32_15] : memref<128x128xf32, #tpu.memory_space<any>> -> memref<1x128xf32, #tpu.memory_space<any>>
    %c5_i32_16 = arith.constant 5 : i32
    %c0_i32_17 = arith.constant 0 : i32
    %30 = tpu.memref_slice %arg6[%c5_i32_16, %c0_i32_17] : memref<8x128xf32, #tpu.memory_space<vmem>> -> memref<1x128xf32, #tpu.memory_space<vmem>>
    tpu.enqueue_dma source(%29 : memref<1x128xf32, #tpu.memory_space<any>>) target(%30 : memref<1x128xf32, #tpu.memory_space<vmem>>) target_semaphore(%arg7 : memref<!tpu.dma_semaphore, #tpu.memory_space<semaphore_mem>>)
    %c6_i32 = arith.constant 6 : i32
    %31 = arith.addi %0, %c6_i32 : i32
    %32 = arith.index_cast %31 : i32 to index
    %33 = memref.load %arg1[%32] : memref<16xi32, #tpu.memory_space<smem>>
    %c0_i32_18 = arith.constant 0 : i32
    %34 = tpu.memref_slice %arg2[%33, %c0_i32_18] : memref<128x128xf32, #tpu.memory_space<any>> -> memref<1x128xf32, #tpu.memory_space<any>>
    %c6_i32_19 = arith.constant 6 : i32
    %c0_i32_20 = arith.constant 0 : i32
    %35 = tpu.memref_slice %arg6[%c6_i32_19, %c0_i32_20] : memref<8x128xf32, #tpu.memory_space<vmem>> -> memref<1x128xf32, #tpu.memory_space<vmem>>
    tpu.enqueue_dma source(%34 : memref<1x128xf32, #tpu.memory_space<any>>) target(%35 : memref<1x128xf32, #tpu.memory_space<vmem>>) target_semaphore(%arg7 : memref<!tpu.dma_semaphore, #tpu.memory_space<semaphore_mem>>)
    %c7_i32 = arith.constant 7 : i32
    %36 = arith.addi %0, %c7_i32 : i32
    %37 = arith.index_cast %36 : i32 to index
    %38 = memref.load %arg1[%37] : memref<16xi32, #tpu.memory_space<smem>>
    %c0_i32_21 = arith.constant 0 : i32
    %39 = tpu.memref_slice %arg2[%38, %c0_i32_21] : memref<128x128xf32, #tpu.memory_space<any>> -> memref<1x128xf32, #tpu.memory_space<any>>
    %c7_i32_22 = arith.constant 7 : i32
    %c0_i32_23 = arith.constant 0 : i32
    %40 = tpu.memref_slice %arg6[%c7_i32_22, %c0_i32_23] : memref<8x128xf32, #tpu.memory_space<vmem>> -> memref<1x128xf32, #tpu.memory_space<vmem>>
    tpu.enqueue_dma source(%39 : memref<1x128xf32, #tpu.memory_space<any>>) target(%40 : memref<1x128xf32, #tpu.memory_space<vmem>>) target_semaphore(%arg7 : memref<!tpu.dma_semaphore, #tpu.memory_space<semaphore_mem>>)
    %c0_i32_24 = arith.constant 0 : i32
    %c0_i32_25 = arith.constant 0 : i32
    %41 = tpu.memref_slice %arg2[%c0_i32_24, %c0_i32_25] : memref<128x128xf32, #tpu.memory_space<any>> -> memref<1x128xf32, #tpu.memory_space<any>>
    %c0_i32_26 = arith.constant 0 : i32
    %c0_i32_27 = arith.constant 0 : i32
    %42 = tpu.memref_slice %arg6[%c0_i32_26, %c0_i32_27] : memref<8x128xf32, #tpu.memory_space<vmem>> -> memref<1x128xf32, #tpu.memory_space<vmem>>
    tpu.wait_dma2 semaphore(%arg7 : memref<!tpu.dma_semaphore, #tpu.memory_space<semaphore_mem>>) src(%41 : memref<1x128xf32, #tpu.memory_space<any>>) dst(%42 : memref<1x128xf32, #tpu.memory_space<vmem>>)
    %c0_i32_28 = arith.constant 0 : i32
    %c0_i32_29 = arith.constant 0 : i32
    %43 = tpu.memref_slice %arg2[%c0_i32_28, %c0_i32_29] : memref<128x128xf32, #tpu.memory_space<any>> -> memref<1x128xf32, #tpu.memory_space<any>>
    %c0_i32_30 = arith.constant 0 : i32
    %c0_i32_31 = arith.constant 0 : i32
    %44 = tpu.memref_slice %arg6[%c0_i32_30, %c0_i32_31] : memref<8x128xf32, #tpu.memory_space<vmem>> -> memref<1x128xf32, #tpu.memory_space<vmem>>
    tpu.wait_dma2 semaphore(%arg7 : memref<!tpu.dma_semaphore, #tpu.memory_space<semaphore_mem>>) src(%43 : memref<1x128xf32, #tpu.memory_space<any>>) dst(%44 : memref<1x128xf32, #tpu.memory_space<vmem>>)
    %c0_i32_32 = arith.constant 0 : i32
    %c0_i32_33 = arith.constant 0 : i32
    %45 = tpu.memref_slice %arg2[%c0_i32_32, %c0_i32_33] : memref<128x128xf32, #tpu.memory_space<any>> -> memref<1x128xf32, #tpu.memory_space<any>>
    %c0_i32_34 = arith.constant 0 : i32
    %c0_i32_35 = arith.constant 0 : i32
    %46 = tpu.memref_slice %arg6[%c0_i32_34, %c0_i32_35] : memref<8x128xf32, #tpu.memory_space<vmem>> -> memref<1x128xf32, #tpu.memory_space<vmem>>
    tpu.wait_dma2 semaphore(%arg7 : memref<!tpu.dma_semaphore, #tpu.memory_space<semaphore_mem>>) src(%45 : memref<1x128xf32, #tpu.memory_space<any>>) dst(%46 : memref<1x128xf32, #tpu.memory_space<vmem>>)
    %c0_i32_36 = arith.constant 0 : i32
    %c0_i32_37 = arith.constant 0 : i32
    %47 = tpu.memref_slice %arg2[%c0_i32_36, %c0_i32_37] : memref<128x128xf32, #tpu.memory_space<any>> -> memref<1x128xf32, #tpu.memory_space<any>>
    %c0_i32_38 = arith.constant 0 : i32
    %c0_i32_39 = arith.constant 0 : i32
    %48 = tpu.memref_slice %arg6[%c0_i32_38, %c0_i32_39] : memref<8x128xf32, #tpu.memory_space<vmem>> -> memref<1x128xf32, #tpu.memory_space<vmem>>
    tpu.wait_dma2 semaphore(%arg7 : memref<!tpu.dma_semaphore, #tpu.memory_space<semaphore_mem>>) src(%47 : memref<1x128xf32, #tpu.memory_space<any>>) dst(%48 : memref<1x128xf32, #tpu.memory_space<vmem>>)
    %c0_i32_40 = arith.constant 0 : i32
    %c0_i32_41 = arith.constant 0 : i32
    %49 = tpu.memref_slice %arg2[%c0_i32_40, %c0_i32_41] : memref<128x128xf32, #tpu.memory_space<any>> -> memref<1x128xf32, #tpu.memory_space<any>>
    %c0_i32_42 = arith.constant 0 : i32
    %c0_i32_43 = arith.constant 0 : i32
    %50 = tpu.memref_slice %arg6[%c0_i32_42, %c0_i32_43] : memref<8x128xf32, #tpu.memory_space<vmem>> -> memref<1x128xf32, #tpu.memory_space<vmem>>
    tpu.wait_dma2 semaphore(%arg7 : memref<!tpu.dma_semaphore, #tpu.memory_space<semaphore_mem>>) src(%49 : memref<1x128xf32, #tpu.memory_space<any>>) dst(%50 : memref<1x128xf32, #tpu.memory_space<vmem>>)
    %c0_i32_44 = arith.constant 0 : i32
    %c0_i32_45 = arith.constant 0 : i32
    %51 = tpu.memref_slice %arg2[%c0_i32_44, %c0_i32_45] : memref<128x128xf32, #tpu.memory_space<any>> -> memref<1x128xf32, #tpu.memory_space<any>>
    %c0_i32_46 = arith.constant 0 : i32
    %c0_i32_47 = arith.constant 0 : i32
    %52 = tpu.memref_slice %arg6[%c0_i32_46, %c0_i32_47] : memref<8x128xf32, #tpu.memory_space<vmem>> -> memref<1x128xf32, #tpu.memory_space<vmem>>
    tpu.wait_dma2 semaphore(%arg7 : memref<!tpu.dma_semaphore, #tpu.memory_space<semaphore_mem>>) src(%51 : memref<1x128xf32, #tpu.memory_space<any>>) dst(%52 : memref<1x128xf32, #tpu.memory_space<vmem>>)
    %c0_i32_48 = arith.constant 0 : i32
    %c0_i32_49 = arith.constant 0 : i32
    %53 = tpu.memref_slice %arg2[%c0_i32_48, %c0_i32_49] : memref<128x128xf32, #tpu.memory_space<any>> -> memref<1x128xf32, #tpu.memory_space<any>>
    %c0_i32_50 = arith.constant 0 : i32
    %c0_i32_51 = arith.constant 0 : i32
    %54 = tpu.memref_slice %arg6[%c0_i32_50, %c0_i32_51] : memref<8x128xf32, #tpu.memory_space<vmem>> -> memref<1x128xf32, #tpu.memory_space<vmem>>
    tpu.wait_dma2 semaphore(%arg7 : memref<!tpu.dma_semaphore, #tpu.memory_space<semaphore_mem>>) src(%53 : memref<1x128xf32, #tpu.memory_space<any>>) dst(%54 : memref<1x128xf32, #tpu.memory_space<vmem>>)
    %c0_i32_52 = arith.constant 0 : i32
    %c0_i32_53 = arith.constant 0 : i32
    %55 = tpu.memref_slice %arg2[%c0_i32_52, %c0_i32_53] : memref<128x128xf32, #tpu.memory_space<any>> -> memref<1x128xf32, #tpu.memory_space<any>>
    %c0_i32_54 = arith.constant 0 : i32
    %c0_i32_55 = arith.constant 0 : i32
    %56 = tpu.memref_slice %arg6[%c0_i32_54, %c0_i32_55] : memref<8x128xf32, #tpu.memory_space<vmem>> -> memref<1x128xf32, #tpu.memory_space<vmem>>
    tpu.wait_dma2 semaphore(%arg7 : memref<!tpu.dma_semaphore, #tpu.memory_space<semaphore_mem>>) src(%55 : memref<1x128xf32, #tpu.memory_space<any>>) dst(%56 : memref<1x128xf32, #tpu.memory_space<vmem>>)
    %c0 = arith.constant 0 : index
    %c0_56 = arith.constant 0 : index
    %57 = vector.load %arg6[%c0, %c0_56] : memref<8x128xf32, #tpu.memory_space<vmem>>, vector<8x128xf32>
    %c0_57 = arith.constant 0 : index
    %c0_58 = arith.constant 0 : index
    %c0_59 = arith.constant 0 : index
    %58 = vector.load %arg3[%c0_57, %c0_58, %c0_59] : memref<2x128x256xf32, #tpu.memory_space<vmem>>, vector<1x128x256xf32>
    %59 = vector.shape_cast %58 : vector<1x128x256xf32> to vector<128x256xf32>
    %cst = arith.constant dense<0.000000e+00> : vector<8x256xf32>
    %60 = tpu.matmul %57, %59, %cst {dimension_numbers = #tpu.dot_dimension_numbers<[1], [0], [0], [1], [0, 0, 1, 1], [], []>} : vector<8x128xf32>, vector<128x256xf32>, vector<8x256xf32> -> vector<8x256xf32>
    %c0_60 = arith.constant 0 : index
    %c0_61 = arith.constant 0 : index
    %c0_62 = arith.constant 0 : index
    %61 = vector.load %arg4[%c0_60, %c0_61, %c0_62] : memref<2x1x256xf32, #tpu.memory_space<vmem>>, vector<1x1x256xf32>
    %62 = vector.shape_cast %61 : vector<1x1x256xf32> to vector<1x256xf32>
    %63 = vector.broadcast %62 : vector<1x256xf32> to vector<8x256xf32>
    %64 = arith.addf %60, %63 : vector<8x256xf32>
    %65 = arith.negf %64 : vector<8x256xf32>
    %66 = math.exp %65 : vector<8x256xf32>
    %cst_63 = arith.constant 1.000000e+00 : f32
    %67 = vector.broadcast %cst_63 : f32 to vector<8x256xf32>
    %68 = arith.addf %67, %66 : vector<8x256xf32>
    %69 = arith.divf %67, %68 : vector<8x256xf32>
    %70 = vector.extract_strided_slice %69 {offsets = [0, 0], sizes = [8, 128], strides = [1, 1]} : vector<8x256xf32> to vector<8x128xf32>
    %71 = vector.extract_strided_slice %69 {offsets = [0, 128], sizes = [8, 128], strides = [1, 1]} : vector<8x256xf32> to vector<8x128xf32>
    %72 = arith.mulf %71, %70 : vector<8x128xf32>
    %cst_64 = arith.constant 1.000000e+00 : f32
    %73 = vector.broadcast %cst_64 : f32 to vector<8x128xf32>
    %74 = arith.subf %73, %71 : vector<8x128xf32>
    %75 = arith.mulf %74, %57 : vector<8x128xf32>
    %76 = arith.addf %72, %75 : vector<8x128xf32>
    %c1 = arith.constant 1 : index
    %c0_65 = arith.constant 0 : index
    %c0_66 = arith.constant 0 : index
    %77 = vector.load %arg3[%c1, %c0_65, %c0_66] : memref<2x128x256xf32, #tpu.memory_space<vmem>>, vector<1x128x256xf32>
    %78 = vector.shape_cast %77 : vector<1x128x256xf32> to vector<128x256xf32>
    %cst_67 = arith.constant dense<0.000000e+00> : vector<8x256xf32>
    %79 = tpu.matmul %76, %78, %cst_67 {dimension_numbers = #tpu.dot_dimension_numbers<[1], [0], [0], [1], [0, 0, 1, 1], [], []>} : vector<8x128xf32>, vector<128x256xf32>, vector<8x256xf32> -> vector<8x256xf32>
    %c1_68 = arith.constant 1 : index
    %c0_69 = arith.constant 0 : index
    %c0_70 = arith.constant 0 : index
    %80 = vector.load %arg4[%c1_68, %c0_69, %c0_70] : memref<2x1x256xf32, #tpu.memory_space<vmem>>, vector<1x1x256xf32>
    %81 = vector.shape_cast %80 : vector<1x1x256xf32> to vector<1x256xf32>
    %82 = vector.broadcast %81 : vector<1x256xf32> to vector<8x256xf32>
    %83 = arith.addf %79, %82 : vector<8x256xf32>
    %84 = arith.negf %83 : vector<8x256xf32>
    %85 = math.exp %84 : vector<8x256xf32>
    %cst_71 = arith.constant 1.000000e+00 : f32
    %86 = vector.broadcast %cst_71 : f32 to vector<8x256xf32>
    %87 = arith.addf %86, %85 : vector<8x256xf32>
    %88 = arith.divf %86, %87 : vector<8x256xf32>
    %89 = vector.extract_strided_slice %88 {offsets = [0, 0], sizes = [8, 128], strides = [1, 1]} : vector<8x256xf32> to vector<8x128xf32>
    %90 = vector.extract_strided_slice %88 {offsets = [0, 128], sizes = [8, 128], strides = [1, 1]} : vector<8x256xf32> to vector<8x128xf32>
    %91 = arith.mulf %90, %89 : vector<8x128xf32>
    %cst_72 = arith.constant 1.000000e+00 : f32
    %92 = vector.broadcast %cst_72 : f32 to vector<8x128xf32>
    %93 = arith.subf %92, %90 : vector<8x128xf32>
    %94 = arith.mulf %93, %76 : vector<8x128xf32>
    %95 = arith.addf %91, %94 : vector<8x128xf32>
    %c0_73 = arith.constant 0 : index
    %c0_74 = arith.constant 0 : index
    %96 = vector.load %arg5[%c0_73, %c0_74] : memref<8x128xf32, #tpu.memory_space<vmem>>, vector<8x128xf32>
    tpu.vector_store %arg5[%c0_73, %c0_74], %95 {strides = array<i32>} : memref<8x128xf32, #tpu.memory_space<vmem>>, vector<8x128xf32>,
    return
  }
  func.func @transform_1(%arg0: i32, %arg1: memref<16xi32, #tpu.memory_space<smem>>) -> (i32, i32, i32) {
    %c0_i32 = arith.constant 0 : i32
    %c0_i32_0 = arith.constant 0 : i32
    %c0_i32_1 = arith.constant 0 : i32
    %c0_i32_2 = arith.constant 0 : i32
    return %c0_i32, %c0_i32_0, %c0_i32_1 : i32, i32, i32
  }
  func.func @transform_2(%arg0: i32, %arg1: memref<16xi32, #tpu.memory_space<smem>>) -> (i32, i32, i32) {
    %c0_i32 = arith.constant 0 : i32
    %c0_i32_0 = arith.constant 0 : i32
    %c0_i32_1 = arith.constant 0 : i32
    %c0_i32_2 = arith.constant 0 : i32
    return %c0_i32, %c0_i32_0, %c0_i32_1 : i32, i32, i32
  }
  func.func @transform_3(%arg0: i32, %arg1: memref<16xi32, #tpu.memory_space<smem>>) -> (i32, i32) {
    %c0_i32 = arith.constant 0 : i32
    %c0_i32_0 = arith.constant 0 : i32
    return %arg0, %c0_i32 : i32, i32
  }
}

</mosaic_0001>

<bundles_post_ra>
// kernel: tpu_custom_call.1
= control target key start
LH: loop header
LB: loop body
LE: loop exit
PB: predicated region body
PF: predicated region fallthrough
CT: control target
= control target key end

     0   :  { %s1446_s0 = inlined_call_operand.hbm [shape: s32[16], index: 0, kind: input, shape index: {}]   ;;  %s1447_s1 = inlined_call_operand.hbm [shape: f32[128,128], index: 1, kind: input, shape index: {}]   ;;  %s1448_s2 = inlined_call_operand.hbm [shape: f32[2,128,256], index: 2, kind: input, shape index: {}]   ;;  %s1449_s3 = inlined_call_operand.vmem [shape: f32[2,1,256], index: 3, kind: input, shape index: {}]   ;;  %s1450_s4 = inlined_call_operand.hbm [shape: f32[16,128], index: 4, kind: output, shape index: {}]  }
   0x1   :  { %1456 = sst [smem:[#allocation34_spill]] %s1448_s2  ;;  %s815_s17 = scalar_lea.hbm %s1446_s0, 16 }
   0x2   :  { %p816_p0 = scmp.ne.s32.totalorder %s1446_s0, %s815_s17  ;;  %p819_p1 = scmp.lt.u32.totalorder %s815_s17, %s1446_s0 }
   0x4   :  { %p821_p2 = pnand %p819_p1, %p816_p0 }
   0x6   :  { %824 = shalt.err (!%p821_p2)  }
   0x7   :  { %s1117_s22 = smov [#allocation5]  }
   0x8   :  { %10 = dma.hbm_to_smem %s1446_s0, 16, %s1117_s22, [#allocation4] }
   0x9   :  { %1089 = dma.done.wait [#allocation4], 16 }
   0xa   :  { %1090 = vsyncadd [#allocation4], 4294967280 }
   0xb   :  { %12 = sfence }
   0xc   :  { %13 = vsyncpa [#allocation7], 0 }
   0xd   :  { %14 = vsyncpa [#allocation8], 0 }
   0xe   :  { %16 = vsyncpa [#allocation8 + $0x1], 0  ;;  %s1168_s25 = smov 0   ;;  %s1170_s26 = smov 0  }
   0xf   :  { %s1172_s27 = smov 0   ;;  %s1174_s28 = smov 0  }
  0x10 LB: > { %1457 = sst [smem:[#allocation32_spill]] %s1111_s27  ;;  %s1189_s0 = sadd.s32 4294967295, %s1115_s28   ;;  %s1115_s28 = sphi %s1174_s28, %s1474_s28   ;;  %s1111_s27 = sphi %s1172_s27, %s1471_s27   ;;  %s1107_s26 = sphi %s1170_s26, %s1473_s26   ;;  %s1103_s25 = sphi %s1168_s25, %s1472_s25  }
  0x11   : > { %s648_s29 = sadd.s32 4294967294, %s1115_s28   ;;  %s1193_s30 = sadd.s32 1, %s1115_s28  }
  0x12   : > { %s71_s5 = sadd.s32 1, %s1111_s27  ;;  %s68_s6 = ssub.s32 %s1115_s28, %s1193_s30 }
  0x13   : > { %p81_p3 = scmp.ne.s32.totalorder %s1111_s27, %s1107_s26  ;;  %p69_p4 = scmp.eq.s32.totalorder %s68_s6, 0 }
  0x14   : > { %p82_p5 = scmp.eq.s32.totalorder %s1189_s0, 1  ;;  %p87_p6 = scmp.ne.s32.totalorder %s1107_s26, %s1103_s25 }
  0x15   : > { %p88_p7 = scmp.eq.s32.totalorder %s648_s29, 1  ;;  %p649_p10 = scmp.ge.s32.totalorder %s1115_s28, 1 }
  0x16   : > { %s1204_s7 = scalar_select %p69_p4, %s1111_s27, %s71_s5  }
  0x17   : > { %p1206_p8 = por %p82_p5, %p81_p3  ;;  %p1210_p9 = por %p88_p7, %p87_p6 }
  0x18   : > { %1458 = sst [smem:[#allocation33_spill]] %s1204_s7  ;;  %p95_p11 = scmp.lt.s32.totalorder %s1115_s28, 3 }
  0x19   : > { %s1459_s8 = scalar_select %p1206_p8, 1, 0 }
  0x1a   : > { %s1460_s9 = scalar_select %p1210_p9, 1, 0 }
  0x1b   : > { %p1451_p12 = scmp.eq.s32.totalorder %s1189_s0, 0  ;;  %p1217_p13 = pnand %p649_p10, %p95_p11 }
  0x1c   : > { %s1118_s11 = smov [#allocation6]   ;;  %s1463_s2 = sld [smem:[#allocation34_spill]] }
  0x1d   : > { %s1461_s10 = scalar_select %p1217_p13, 1, 0 }
  0x1e   : > { %s107_s12 = sshll.u32 %s1118_s11, 4  ;;  %p743_p0 = pneg %p1217_p13  ;;  %s108_s12 = int_to_ptr.vmem [resolvable:$true] %s107_s12 }
  0x20   : > { %p1225_p1 = pnand %p1451_p12, %p743_p0 }
  0x22   : > { %s825_s16 = scalar_lea.hbm %s1463_s2, 8192  ;;  %p827_p3 = pneg %p1225_p1 }
  0x23   : > { %p826_p2 = scmp.ne.s32.totalorder %s1463_s2, %s825_s16  ;;  %p832_p6 = scmp.lt.u32.totalorder %s825_s16, %s1463_s2 }
  0x25   : > { %p828_p4 = pnand %p827_p3, %p826_p2 }
  0x27   : > { %p829_p5 = pneg %p828_p4 }
  0x29   : > { %p834_p7 = pnand %p832_p6, %p829_p5 }
  0x2b   : > { %837 = shalt.err (!%p834_p7)
}
  0x2c   : > { %s838_s21 = scalar_lea.vmem %s108_s12, 8192  ;;  %p846_p12 = scmp.lt.s32.totalorder %s108_s12, %s108_s12 }
  0x2d   : > { %p839_p10 = scmp.ne.s32.totalorder %s108_s12, %s838_s21  ;;  %p847_p9 = scmp.lt.s32.totalorder %s838_s21, %s838_s21 }
  0x2f   : > { %p841_p11 = pnand %p839_p10, %p827_p3  ;;  %p848_p8 = por %p847_p9, %p846_p12 }
  0x31   : > { %p842_p0 = pneg %p841_p11 }
  0x33   : > { %p849_p13 = pnand %p848_p8, %p842_p0 }
  0x35   : > { %852 = shalt.err (!%p849_p13)
}
  0x36   : > { %s1119_s22 = smov 256   ;;  %s1120_s23 = smov 16  }
  0x37   : > { %746 = dma.hbm_to_vmem [thread:$0]  (!%p1225_p1), %s1463_s2, 8192, %s108_s12, [#allocation7], %s1119_s22, %s1119_s22, %s1120_s23  }
  0x38   : > { %p1464_p2 = scmp.ne.s32.totalorder %s1461_s10, 0 }
  0x39   : > { %p1465_p4 = scmp.eq.s32.totalorder (!%p1464_p2), %s1189_s0, 0 }
  0x3a   : > { %126 = sbr.rel (%p1464_p2) target bundleno = 792 (0x318), region = 28 }
  0x41   : > { %1092 = dma.done.wait (%p1465_p4), [#allocation7], 8192   ;;  %p1466_p3 = pmov %p1465_p4 }
  0x42   : > { %s1454_s5 = sand.u32 1, %s1107_s26   ;;  %s1253_s6 = sshll.u32 %s1189_s0, 3 }
  0x43   : > { %1094 = vsyncadd (%p1466_p3), [#allocation7], 4294959104  ;;  %s1257_s11 = sshll.u32 %s1454_s5, 3  ;;  %s144_s10 = sld [smem:[#allocation5 + %s1253_s6]] }
  0x44   : > { %s1121_s12 = smov [#allocation2]   ;;  %s158_s14 = sadd.s32 1, %s1253_s6 }
  0x45   : > { %s154_s13 = sshll.u32 %s1121_s12, 4  ;;  %s1263_s15 = sld [smem:[#allocation5 + %s158_s14]]  ;;  %s1261_s13 = int_to_ptr.vmem [resolvable:$true] %s154_s13 }
  0x46   : > { %s174_s16 = sadd.s32 2, %s1253_s6  ;;  %s1122_s17 = smov [#allocation2 + $0x1]  }
  0x47   : > { %s170_s18 = sshll.u32 %s1122_s17, 4  ;;  %s1266_s19 = sld [smem:[#allocation5 + %s174_s16]]  ;;  %s1268_s18 = int_to_ptr.vmem [resolvable:$true] %s170_s18 }
  0x48   : > { %s1276_s5 = scalar_lea.hbm %s1447_s1, 2048 }
  0x49   : > { %s655_s20 = sshll.u32 %s144_s10, 4 }
  0x4a   : > { %s146_s23 = scalar_lea.hbm %s1447_s1, %s655_s20 }
  0x4b   : > { %s853_s24 = scalar_lea.hbm %s146_s23, 16  ;;  %p856_p9 = scmp.lt.u32.totalorder %s146_s23, %s1447_s1 }
  0x4c   : > { %p854_p8 = scmp.ne.s32.totalorder %s146_s23, %s853_s24  ;;  %p857_p12 = scmp.lt.u32.totalorder %s1276_s5, %s853_s24 }
  0x4d   : > { %p859_p1 = scmp.lt.u32.totalorder %s853_s24, %s146_s23 }
  0x4e   : > { %p858_p13 = por %p857_p12, %p856_p9 }
  0x50   : > { %p860_p5 = por %p859_p1, %p858_p13 }
  0x52   : > { %p861_p6 = pnand %p860_p5, %p854_p8 }
  0x54   : > { %864 = shalt.err (!%p861_p6)  }
  0x55   : > { %s865_s10 = scalar_lea.vmem %s1261_s13, 16  ;;  %s1285_s16 = scalar_lea.vmem %s1261_s13, 128 }
  0x56   : > { %p866_p7 = scmp.ne.s32.totalorder %s1261_s13, %s865_s10  ;;  %p870_p10 = scmp.lt.s32.totalorder %s1261_s13, %s1261_s13 }
  0x57   : > { %p871_p11 = scmp.lt.s32.totalorder %s1285_s16, %s865_s10 }
  0x59   : > { %p872_p0 = por %p871_p11, %p870_p10 }
  0x5b   : > { %p873_p2 = pnand %p872_p0, %p866_p7 }
  0x5d   : > { %876 = shalt.err (!%p873_p2)  }
  0x5e   : > { %157 = dma.hbm_to_vmem [thread:$0]  %s146_s23, 16, %s1261_s13, [#allocation3] }
  0x5f   : > { %s656_s2 = sshll.u32 %s1263_s15, 4  ;;  %s1123_s17 = smov [#allocation2 + $0x2]  }
  0x60   : > { %s186_s20 = sshll.u32 %s1123_s17, 4  ;;  %s161_s24 = scalar_lea.hbm %s1447_s1, %s656_s2  ;;  %s1295_s20 = int_to_ptr.vmem [resolvable:$true] %s186_s20 }
  0x61   : > { %s877_s29 = scalar_lea.hbm %s161_s24, 16  ;;  %p880_p3 = scmp.lt.u32.totalorder %s161_s24, %s1447_s1 }
  0x62   : > { %p878_p4 = scmp.ne.s32.totalorder %s161_s24, %s877_s29  ;;  %p881_p8 = scmp.lt.u32.totalorder %s1276_s5, %s877_s29 }
  0x63   : > { %p883_p12 = scmp.lt.u32.totalorder %s877_s29, %s161_s24 }
  0x64   : > { %p882_p9 = por %p881_p8, %p880_p3 }
  0x66   : > { %p884_p13 = por %p883_p12, %p882_p9 }
  0x68   : > { %p885_p1 = pnand %p884_p13, %p878_p4 }
  0x6a   : > { %888 = shalt.err (!%p885_p1)  }
  0x6b   : > { %s889_s15 = scalar_lea.vmem %s1268_s18, 16  ;;  %p894_p6 = scmp.lt.s32.totalorder %s1268_s18, %s1261_s13 }
  0x6c   : > { %p890_p5 = scmp.ne.s32.totalorder %s1268_s18, %s889_s15  ;;  %p895_p7 = scmp.lt.s32.totalorder %s1285_s16, %s889_s15 }
  0x6e   : > { %p896_p10 = por %p895_p7, %p894_p6 }
  0x70   : > { %p897_p11 = pnand %p896_p10, %p890_p5 }
  0x72   : > { %900 = shalt.err (!%p897_p11)  }
  0x73   : > { %173 = dma.hbm_to_vmem [thread:$0]  %s161_s24, 16, %s1268_s18, [#allocation3] }
  0x74   : > { %s657_s23 = sshll.u32 %s1266_s19, 4  ;;  %s190_s10 = sadd.s32 3, %s1253_s6 }
  0x75   : > { %s177_s21 = scalar_lea.hbm %s1447_s1, %s657_s23  ;;  %s1312_s22 = sld [smem:[#allocation5 + %s190_s10]] }
  0x76   : > { %s901_s29 = scalar_lea.hbm %s177_s21, 16  ;;  %p904_p2 = scmp.lt.u32.totalorder %s177_s21, %s1447_s1 }
  0x77   : > { %p902_p0 = scmp.ne.s32.totalorder %s177_s21, %s901_s29  ;;  %p905_p4 = scmp.lt.u32.totalorder %s1276_s5, %s901_s29 }
  0x78   : > { %p907_p8 = scmp.lt.u32.totalorder %s901_s29, %s177_s21 }
  0x79   : > { %p906_p3 = por %p905_p4, %p904_p2 }
  0x7b   : > { %p908_p9 = por %p907_p8, %p906_p3 }
  0x7d   : > { %p909_p12 = pnand %p908_p9, %p902_p0 }
  0x7f   : > { %912 = shalt.err (!%p909_p12)  }
  0x80   : > { %s913_s18 = scalar_lea.vmem %s1295_s20, 16  ;;  %p918_p1 = scmp.lt.s32.totalorder %s1295_s20, %s1261_s13 }
  0x81   : > { %p914_p13 = scmp.ne.s32.totalorder %s1295_s20, %s913_s18  ;;  %p919_p5 = scmp.lt.s32.totalorder %s1285_s16, %s913_s18 }
  0x83   : > { %p920_p6 = por %p919_p5, %p918_p1 }
  0x85   : > { %p921_p7 = pnand %p920_p6, %p914_p13 }
  0x87   : > { %924 = shalt.err (!%p921_p7)  }
  0x88   : > { %189 = dma.hbm_to_vmem [thread:$0]  %s177_s21, 16, %s1295_s20, [#allocation3] }
  0x89   : > { %s206_s19 = sadd.s32 4, %s1253_s6  ;;  %s1124_s24 = smov [#allocation2 + $0x3]  }
  0x8a   : > { %s202_s15 = sshll.u32 %s1124_s24, 4  ;;  %s207_s23 = sld [smem:[#allocation5 + %s206_s19]]  ;;  %s203_s15 = int_to_ptr.vmem [resolvable:$true] %s202_s15 }
  0x8b   : > { %s1125_s10 = smov [#allocation2 + $0x4]   ;;  %s222_s17 = sadd.s32 5, %s1253_s6 }
  0x8c   : > { %s218_s2 = sshll.u32 %s1125_s10, 4  ;;  %s658_s29 = sshll.u32 %s1312_s22, 4  ;;  %s1327_s2 = int_to_ptr.vmem [resolvable:$true] %s218_s2 }
  0x8d   : > { %s193_s18 = scalar_lea.hbm %s1447_s1, %s658_s29  ;;  %s1332_s7 = sld [smem:[#allocation5 + %s222_s17]] }
  0x8e   : > { %s925_s27 = scalar_lea.hbm %s193_s18, 16  ;;  %p928_p11 = scmp.lt.u32.totalorder %s193_s18, %s1447_s1 }
  0x8f   : > { %p926_p10 = scmp.ne.s32.totalorder %s193_s18, %s925_s27  ;;  %p929_p0 = scmp.lt.u32.totalorder %s1276_s5, %s925_s27 }
  0x90   : > { %p931_p4 = scmp.lt.u32.totalorder %s925_s27, %s193_s18 }
  0x91   : > { %p930_p2 = por %p929_p0, %p928_p11 }
  0x93   : > { %p932_p3 = por %p931_p4, %p930_p2 }
  0x95   : > { %p933_p8 = pnand %p932_p3, %p926_p10 }
  0x97   : > { %936 = shalt.err (!%p933_p8)  }
  0x98   : > { %s937_s22 = scalar_lea.vmem %s203_s15, 16  ;;  %p942_p12 = scmp.lt.s32.totalorder %s203_s15, %s1261_s13 }
  0x99   : > { %p938_p9 = scmp.ne.s32.totalorder %s203_s15, %s937_s22  ;;  %p943_p13 = scmp.lt.s32.totalorder %s1285_s16, %s937_s22 }
  0x9b   : > { %p944_p1 = por %p943_p13, %p942_p12 }
  0x9d   : > { %p945_p5 = pnand %p944_p1, %p938_p9 }
  0x9f   : > { %948 = shalt.err (!%p945_p5)  }
  0xa0   : > { %205 = dma.hbm_to_vmem [thread:$0]  %s193_s18, 16, %s203_s15, [#allocation3] }
  0xa1   : > { %s659_s19 = sshll.u32 %s207_s23, 4  ;;  %s1126_s27 = smov [#allocation2 + $0x5]  }
  0xa2   : > { %s209_s17 = scalar_lea.hbm %s1447_s1, %s659_s19  ;;  %s234_s29 = sshll.u32 %s1126_s27, 4  ;;  %s235_s29 = int_to_ptr.vmem [resolvable:$true] %s234_s29 }
  0xa3   : > { %s949_s12 = scalar_lea.hbm %s209_s17, 16  ;;  %p952_p7 = scmp.lt.u32.totalorder %s209_s17, %s1447_s1 }
  0xa4   : > { %p950_p6 = scmp.ne.s32.totalorder %s209_s17, %s949_s12  ;;  %p953_p10 = scmp.lt.u32.totalorder %s1276_s5, %s949_s12 }
  0xa5   : > { %p955_p0 = scmp.lt.u32.totalorder %s949_s12, %s209_s17 }
  0xa6   : > { %p954_p11 = por %p953_p10, %p952_p7 }
  0xa8   : > { %p956_p2 = por %p955_p0, %p954_p11 }
  0xaa   : > { %p957_p4 = pnand %p956_p2, %p950_p6 }
  0xac   : > { %960 = shalt.err (!%p957_p4)  }
  0xad   : > { %s961_s15 = scalar_lea.vmem %s1327_s2, 16  ;;  %p966_p8 = scmp.lt.s32.totalorder %s1327_s2, %s1261_s13 }
  0xae   : > { %p962_p3 = scmp.ne.s32.totalorder %s1327_s2, %s961_s15  ;;  %p967_p9 = scmp.lt.s32.totalorder %s1285_s16, %s961_s15 }
  0xb0   : > { %p968_p12 = por %p967_p9, %p966_p8 }
  0xb2   : > { %p969_p13 = pnand %p968_p12, %p962_p3 }
  0xb4   : > { %972 = shalt.err (!%p969_p13)  }
  0xb5   : > { %221 = dma.hbm_to_vmem [thread:$0]  %s209_s17, 16, %s1327_s2, [#allocation3] }
  0xb6   : > { %s238_s23 = sadd.s32 6, %s1253_s6  ;;  %s660_s18 = sshll.u32 %s1332_s7, 4 }
  0xb7   : > { %s239_s21 = sld [smem:[#allocation5 + %s238_s23]]  ;;  %s225_s24 = scalar_lea.hbm %s1447_s1, %s660_s18 }
  0xb8   : > { %s973_s10 = scalar_lea.hbm %s225_s24, 16  ;;  %p976_p5 = scmp.lt.u32.totalorder %s225_s24, %s1447_s1 }
  0xb9   : > { %p974_p1 = scmp.ne.s32.totalorder %s225_s24, %s973_s10  ;;  %p977_p6 = scmp.lt.u32.totalorder %s1276_s5, %s973_s10 }
  0xba   : > { %p979_p10 = scmp.lt.u32.totalorder %s973_s10, %s225_s24 }
  0xbb   : > { %p978_p7 = por %p977_p6, %p976_p5 }
  0xbd   : > { %p980_p11 = por %p979_p10, %p978_p7 }
  0xbf   : > { %p981_p0 = pnand %p980_p11, %p974_p1 }
  0xc1   : > { %984 = shalt.err (!%p981_p0)  }
  0xc2   : > { %s985_s2 = scalar_lea.vmem %s235_s29, 16  ;;  %p990_p4 = scmp.lt.s32.totalorder %s235_s29, %s1261_s13 }
  0xc3   : > { %p986_p2 = scmp.ne.s32.totalorder %s235_s29, %s985_s2  ;;  %p991_p3 = scmp.lt.s32.totalorder %s1285_s16, %s985_s2 }
  0xc5   : > { %p992_p8 = por %p991_p3, %p990_p4 }
  0xc7   : > { %p993_p9 = pnand %p992_p8, %p986_p2 }
  0xc9   : > { %996 = shalt.err (!%p993_p9)  }
  0xca   : > { %237 = dma.hbm_to_vmem [thread:$0]  %s225_s24, 16, %s235_s29, [#allocation3] }
  0xcb   : > { %s1127_s7 = smov [#allocation2 + $0x6]   ;;  %s254_s14 = sadd.s32 7, %s1253_s6 }
  0xcc   : > { %s250_s17 = sshll.u32 %s1127_s7, 4  ;;  %s255_s20 = sld [smem:[#allocation5 + %s254_s14]]  ;;  %s251_s17 = int_to_ptr.vmem [resolvable:$true] %s250_s17 }
  0xcd   : > { %s661_s15 = sshll.u32 %s239_s21, 4  ;;  %s1128_s23 = smov [#allocation2 + $0x7]  }
  0xce   : > { %s266_s18 = sshll.u32 %s1128_s23, 4  ;;  %s241_s10 = scalar_lea.hbm %s1447_s1, %s661_s15  ;;  %s267_s18 = int_to_ptr.vmem [resolvable:$true] %s266_s18 }
  0xcf   : > { %s997_s27 = scalar_lea.hbm %s241_s10, 16  ;;  %p1000_p13 = scmp.lt.u32.totalorder %s241_s10, %s1447_s1 }
  0xd0   : > { %p998_p12 = scmp.ne.s32.totalorder %s241_s10, %s997_s27  ;;  %p1001_p1 = scmp.lt.u32.totalorder %s1276_s5, %s997_s27 }
  0xd1   : > { %p1003_p6 = scmp.lt.u32.totalorder %s997_s27, %s241_s10 }
  0xd2   : > { %p1002_p5 = por %p1001_p1, %p1000_p13 }
  0xd4   : > { %p1004_p7 = por %p1003_p6, %p1002_p5 }
  0xd6   : > { %p1005_p10 = pnand %p1004_p7, %p998_p12 }
  0xd8   : > { %1008 = shalt.err (!%p1005_p10)  }
  0xd9   : > { %s1009_s6 = scalar_lea.vmem %s251_s17, 16  ;;  %p1014_p0 = scmp.lt.s32.totalorder %s251_s17, %s1261_s13 }
  0xda   : > { %p1010_p11 = scmp.ne.s32.totalorder %s251_s17, %s1009_s6  ;;  %p1015_p2 = scmp.lt.s32.totalorder %s1285_s16, %s1009_s6 }
  0xdc   : > { %p1016_p4 = por %p1015_p2, %p1014_p0 }
  0xde   : > { %p1017_p3 = pnand %p1016_p4, %p1010_p11 }
  0xe0   : > { %1020 = shalt.err (!%p1017_p3)  }
  0xe1   : > { %253 = dma.hbm_to_vmem [thread:$0]  %s241_s10, 16, %s251_s17, [#allocation3] }
  0xe2   : > { %s662_s29 = sshll.u32 %s255_s20, 4 }
  0xe3   : > { %s257_s7 = scalar_lea.hbm %s1447_s1, %s662_s29 }
  0xe4   : > { %s1021_s14 = scalar_lea.hbm %s257_s7, 16  ;;  %p1024_p9 = scmp.lt.u32.totalorder %s257_s7, %s1447_s1 }
  0xe5   : > { %p1022_p8 = scmp.ne.s32.totalorder %s257_s7, %s1021_s14  ;;  %p1025_p12 = scmp.lt.u32.totalorder %s1276_s5, %s1021_s14 }
  0xe6   : > { %p1027_p1 = scmp.lt.u32.totalorder %s1021_s14, %s257_s7 }
  0xe7   : > { %p1026_p13 = por %p1025_p12, %p1024_p9 }
  0xe9   : > { %p1028_p5 = por %p1027_p1, %p1026_p13 }
  0xeb   : > { %p1029_p6 = pnand %p1028_p5, %p1022_p8 }
  0xed   : > { %1032 = shalt.err (!%p1029_p6)  }
  0xee   : > { %s1033_s17 = scalar_lea.vmem %s267_s18, 16  ;;  %p1038_p10 = scmp.lt.s32.totalorder %s267_s18, %s1261_s13 }
  0xef   : > { %p1034_p7 = scmp.ne.s32.totalorder %s267_s18, %s1033_s17  ;;  %p1039_p11 = scmp.lt.s32.totalorder %s1285_s16, %s1033_s17 }
  0xf1   : > { %p1040_p0 = por %p1039_p11, %p1038_p10 }
  0xf3   : > { %p1041_p2 = pnand %p1040_p0, %p1034_p7 }
  0xf5   : > { %1044 = shalt.err (!%p1041_p2)  }
  0xf6   : > { %269 = dma.hbm_to_vmem [thread:$0]  %s257_s7, 16, %s267_s18, [#allocation3] }
  0xf7   : > { %s142_s20 = scalar_lea.vmem [#allocation9], %s1257_s11 }
  0xf8   : > { %1095 = dma.done.wait [#allocation3], 128 }
  0xf9   : > { %1096 = vsyncadd [#allocation3], 4294967168  ;;  %v1129_v0 = vmov 0.0   ;;  %v289_v1 = vld [vmem:[#allocation6 + $0x8] sm:$0xff]  ;;  %v291_v2 = vld [vmem:[#allocation6 + $0x18] sm:$0xff]  ;;  %s669_s22 = sshll.u32 %s1189_s0, 7 }
  0xfa   : > { %396 = vmatprep.mubr.f32.mxu0 %v1129_v0  ;;  %529 = vmatprep.mubr.f32.mxu1 %v1129_v0  ;;  %v288_v3 = vld [vmem:[#allocation6] sm:$0xff]  ;;  %v673_v4 = vpack.c.bf16 %v291_v2, %v289_v1  ;;  %v290_v5 = vld [vmem:[#allocation6 + $0x10] sm:$0xff]  ;;  %v293_v6 = vld [vmem:[#allocation6 + $0x28] sm:$0xff]  ;;  %s567_s19 = sshll.u32 %s142_s20, 4  ;;  %s1400_s12 = scalar_lea.hbm %s1450_s4, %s669_s22  ;;  %s1402_s19 = int_to_ptr.vmem [resolvable:$true] %s567_s19 }
  0xfb   : > { %v295_v7 = vld [vmem:[#allocation6 + $0x38] sm:$0xff]  ;;  %v675_v8 = vpack.c.bf16 %v290_v5, %v288_v3  ;;  %v292_v10 = vld [vmem:[#allocation6 + $0x20] sm:$0xff]  ;;  %v294_v11 = vld [vmem:[#allocation6 + $0x30] sm:$0xff]  ;;  %s1467_s2 = sand.u32 1, %s1107_s26   ;;  %s1045_s29 = scalar_lea.vmem %s1402_s19, 128 }
  0xfc   : > { %v677_v9 = vpack.c.bf16 %v295_v7, %v293_v6  ;;  %v297_v12 = vld [vmem:[#allocation6 + $0x48] sm:$0xff]  ;;  %674 = vmatprep.subr.bf16.mxu0 %v673_v4  ;;  %v299_v13 = vld [vmem:[#allocation6 + $0x58] sm:$0xff]  ;;  %v679_v14 = vpack.c.bf16 %v294_v11, %v292_v10  ;;  %v296_v16 = vld [vmem:[#allocation6 + $0x40] sm:$0xff]  ;;  %s554_s6 = scalar_lea.sflag [#allocation8], %s1467_s2  ;;  %p1046_p4 = scmp.ne.s32.totalorder %s1402_s19, %s1045_s29 }
  0xfd   : > { %676 = vmatpush1.bf16.msra.mxu0 %v675_v8  ;;  %v681_v15 = vpack.c.bf16 %v299_v13, %v297_v12  ;;  %v298_v17 = vld [vmem:[#allocation6 + $0x50] sm:$0xff]  ;;  %v301_v18 = vld [vmem:[#allocation6 + $0x68] sm:$0xff]  ;;  %v303_v19 = vld [vmem:[#allocation6 + $0x78] sm:$0xff]  ;;  %p1468_p3 = scmp.ne.s32.totalorder %s1459_s8, 0  ;;  %s1130_s0 = smov [#allocation9]  }
  0xfe   : > { %678 = vmatprep.subr.bf16.mxu0 %v677_v9  ;;  %v683_v20 = vpack.c.bf16 %v298_v17, %v296_v16  ;;  %v685_v21 = vpack.c.bf16 %v303_v19, %v301_v18  ;;  %v300_v22 = vld [vmem:[#allocation6 + $0x60] sm:$0xff]  ;;  %v302_v23 = vld [vmem:[#allocation6 + $0x70] sm:$0xff]  ;;  %v305_v24 = vld [vmem:[#allocation6 + $0x88] sm:$0xff]  ;;  %s1049_s21 = sshll.u32 %s1130_s0, 4  ;;  %s1050_s21 = int_to_ptr.vmem [resolvable:$false] %s1049_s21 }
  0xff   : > { %v307_v25 = vld [vmem:[#allocation6 + $0x98] sm:$0xff]  ;;  %v687_v26 = vpack.c.bf16 %v302_v23, %v300_v22  ;;  %v304_v28 = vld [vmem:[#allocation6 + $0x80] sm:$0xff]  ;;  %v306_v29 = vld [vmem:[#allocation6 + $0x90] sm:$0xff]  ;;  %p1047_p8 = pnand %p1046_p4, %p1468_p3  ;;  %s1051_s24 = scalar_lea.vmem %s1050_s21, 256 }
 0x100   : > { %v689_v27 = vpack.c.bf16 %v307_v25, %v305_v24  ;;  %v309_v30 = vld [vmem:[#allocation6 + $0xa8] sm:$0xff]  ;;  %v311_v31 = vld [vmem:[#allocation6 + $0xb8] sm:$0xff]  ;;  %v691_v32 = vpack.c.bf16 %v306_v29, %v304_v28  ;;  %v308_v34 = vld [vmem:[#allocation6 + $0xa0] sm:$0xff]  ;;  %p1052_p12 = scmp.lt.s32.totalorder %s1402_s19, %s1050_s21  ;;  %p1053_p13 = scmp.lt.s32.totalorder %s1051_s24, %s1045_s29 }
 0x101   : > { %680 = vmatpush1.bf16.msra.mxu0 %v679_v14  ;;  %v693_v33 = vpack.c.bf16 %v311_v31, %v309_v30  ;;  %v310_v35 = vld [vmem:[#allocation6 + $0xb0] sm:$0xff]  ;;  %v313_v36 = vld [vmem:[#allocation6 + $0xc8] sm:$0xff]  ;;  %v315_v37 = vld [vmem:[#allocation6 + $0xd8] sm:$0xff]  ;;  %p1048_p9 = pneg %p1047_p8 }
 0x102   : > { %682 = vmatprep.subr.bf16.mxu0 %v681_v15  ;;  %v695_v38 = vpack.c.bf16 %v310_v35, %v308_v34  ;;  %v697_v39 = vpack.c.bf16 %v315_v37, %v313_v36  ;;  %v312_v40 = vld [vmem:[#allocation6 + $0xc0] sm:$0xff]  ;;  %v314_v41 = vld [vmem:[#allocation6 + $0xd0] sm:$0xff]  ;;  %v317_v42 = vld [vmem:[#allocation6 + $0xe8] sm:$0xff]  ;;  %v322_v34 = vlaneseq  ;;  %p1054_p1 = por %p1053_p13, %p1052_p12 }
 0x103   : > { %v319_v43 = vld [vmem:[#allocation6 + $0xf8] sm:$0xff]  ;;  %v699_v44 = vpack.c.bf16 %v314_v41, %v312_v40  ;;  %v316_v46 = vld [vmem:[#allocation6 + $0xe0] sm:$0xff]  ;;  %v318_v47 = vld [vmem:[#allocation6 + $0xf0] sm:$0xff] }
 0x104   : > { %v701_v45 = vpack.c.bf16 %v319_v43, %v317_v42  ;;  %v703_v48 = vpack.c.bf16 %v318_v47, %v316_v46  ;;  %v1384_v49 = vld [vmem:[#allocation2] sm:$0xff]  ;;  %v421_v50 = vld [vmem:[#allocation6 + $0x108] sm:$0xff]  ;;  %v420_v53 = vld [vmem:[#allocation6 + $0x100] sm:$0xff]  ;;  %v323_v35 = vshrl.u32 %v322_v34, 7  ;;  %p1055_p5 = pnand %p1054_p1, %p1048_p9 }
 0x105   : > { %684 = vmatpush1.bf16.msra.mxu0 %v683_v20  ;;  %v423_v51 = vld [vmem:[#allocation6 + $0x118] sm:$0xff]  ;;  %v422_v54 = vld [vmem:[#allocation6 + $0x110] sm:$0xff]  ;;  %v425_v56 = vld [vmem:[#allocation6 + $0x128] sm:$0xff] }
 0x106   : > { %686 = vmatprep.subr.bf16.mxu0 %v685_v21  ;;  %v705_v52 = vpack.c.bf16 %v423_v51, %v421_v50  ;;  %v707_v55 = vpack.c.bf16 %v422_v54, %v420_v53  ;;  %v427_v57 = vld [vmem:[#allocation6 + $0x138] sm:$0xff]  ;;  %v424_v59 = vld [vmem:[#allocation6 + $0x120] sm:$0xff]  ;;  %v426_v60 = vld [vmem:[#allocation6 + $0x130] sm:$0xff]  ;;  %v324_v36 = vsub.s32 0, %v323_v35 }
 0x107   : > { %v709_v58 = vpack.c.bf16 %v427_v57, %v425_v56  ;;  %v711_v61 = vpack.c.bf16 %v426_v60, %v424_v59  ;;  %v429_v62 = vld [vmem:[#allocation6 + $0x148] sm:$0xff]  ;;  %v431_v63 = vld [vmem:[#allocation6 + $0x158] sm:$0xff]  ;;  %v428_v1 = vld [vmem:[#allocation6 + $0x140] sm:$0xff] }
 0x108   : > { %706 = vmatprep.subr.bf16.mxu1 %v705_v52  ;;  %v713_v0 = vpack.c.bf16 %v431_v63, %v429_v62  ;;  %v430_v2 = vld [vmem:[#allocation6 + $0x150] sm:$0xff]  ;;  %v433_v4 = vld [vmem:[#allocation6 + $0x168] sm:$0xff]  ;;  %v435_v5 = vld [vmem:[#allocation6 + $0x178] sm:$0xff] }
 0x109   : > { %688 = vmatpush1.bf16.msra.mxu0 %v687_v26  ;;  %708 = vmatpush1.bf16.msra.mxu1 %v707_v55  ;;  %v715_v3 = vpack.c.bf16 %v430_v2, %v428_v1  ;;  %v717_v6 = vpack.c.bf16 %v435_v5, %v433_v4  ;;  %v432_v7 = vld [vmem:[#allocation6 + $0x160] sm:$0xff]  ;;  %v434_v8 = vld [vmem:[#allocation6 + $0x170] sm:$0xff]  ;;  %v437_v10 = vld [vmem:[#allocation6 + $0x188] sm:$0xff] }
 0x10a   : > { %690 = vmatprep.subr.bf16.mxu0 %v689_v27  ;;  %710 = vmatprep.subr.bf16.mxu1 %v709_v58  ;;  %v719_v9 = vpack.c.bf16 %v434_v8, %v432_v7  ;;  %v439_v11 = vld [vmem:[#allocation6 + $0x198] sm:$0xff]  ;;  %v436_v13 = vld [vmem:[#allocation6 + $0x180] sm:$0xff]  ;;  %v438_v14 = vld [vmem:[#allocation6 + $0x190] sm:$0xff] }
 0x10b   : > { %v721_v12 = vpack.c.bf16 %v439_v11, %v437_v10  ;;  %v723_v15 = vpack.c.bf16 %v438_v14, %v436_v13  ;;  %v441_v16 = vld [vmem:[#allocation6 + $0x1a8] sm:$0xff]  ;;  %v443_v17 = vld [vmem:[#allocation6 + $0x1b8] sm:$0xff]  ;;  %v440_v18 = vld [vmem:[#allocation6 + $0x1a0] sm:$0xff] }
 0x10c   : > { %v725_v19 = vpack.c.bf16 %v443_v17, %v441_v16  ;;  %v442_v20 = vld [vmem:[#allocation6 + $0x1b0] sm:$0xff]  ;;  %v445_v21 = vld [vmem:[#allocation6 + $0x1c8] sm:$0xff]  ;;  %v447_v22 = vld [vmem:[#allocation6 + $0x1d8] sm:$0xff] }
 0x10d   : > { %692 = vmatpush1.bf16.msra.mxu0 %v691_v32  ;;  %712 = vmatpush1.bf16.msra.mxu1 %v711_v61  ;;  %v727_v23 = vpack.c.bf16 %v442_v20, %v440_v18  ;;  %v729_v24 = vpack.c.bf16 %v447_v22, %v445_v21  ;;  %v444_v25 = vld [vmem:[#allocation6 + $0x1c0] sm:$0xff]  ;;  %v446_v26 = vld [vmem:[#allocation6 + $0x1d0] sm:$0xff]  ;;  %v449_v27 = vld [vmem:[#allocation6 + $0x1e8] sm:$0xff] }
 0x10e   : > { %694 = vmatprep.subr.bf16.mxu0 %v693_v33  ;;  %714 = vmatprep.subr.bf16.mxu1 %v713_v0  ;;  %v451_v28 = vld [vmem:[#allocation6 + $0x1f8] sm:$0xff]  ;;  %v731_v29 = vpack.c.bf16 %v446_v26, %v444_v25  ;;  %v448_v31 = vld [vmem:[#allocation6 + $0x1e0] sm:$0xff]  ;;  %v450_v32 = vld [vmem:[#allocation6 + $0x1f0] sm:$0xff] }
 0x10f   : > { %v733_v30 = vpack.c.bf16 %v451_v28, %v449_v27  ;;  %v735_v33 = vpack.c.bf16 %v450_v32, %v448_v31  ;;  %v320_v37 = vld [vmem:[%s1449_s3] sm:$0x3]  ;;  %v665_v58 = vld [vmem:[%s1449_s3 + $0x2] sm:$0x3] }
 0x110   : > { %v458_v59 = vrot.slane %v665_v58, %v324_v36 }
 0x111   : > { %696 = vmatpush1.bf16.msra.mxu0 %v695_v38  ;;  %716 = vmatpush1.bf16.msra.mxu1 %v715_v3  ;;  %v328_v38 = vsub.s32 1, %v323_v35 }
 0x112   : > { %698 = vmatprep.subr.bf16.mxu0 %v697_v39  ;;  %718 = vmatprep.subr.bf16.mxu1 %v717_v6  ;;  %v325_v39 = vrot.slane %v320_v37, %v324_v36 }
 0x113   : > { %v329_v40 = vrot.slane %v320_v37, %v328_v38  ;;  %v462_v60 = vrot.slane %v665_v58, %v328_v38 }
 0x115   : > { %700 = vmatpush1.bf16.msra.mxu0 %v699_v44  ;;  %720 = vmatpush1.bf16.msra.mxu1 %v719_v9 }
 0x116   : > { %702 = vmatprep.subr.bf16.mxu0 %v701_v45  ;;  %722 = vmatprep.subr.bf16.mxu1 %v721_v12 }
 0x119   : > { %704 = vmatpush1.bf16.msra.mxu0 %v703_v48  ;;  %724 = vmatpush1.bf16.msra.mxu1 %v723_v15 }
 0x11a   : > { %726 = vmatprep.subr.bf16.mxu1 %v725_v19 }
 0x11c   : > { %397 = vmatmul.mubr.f32.vlgmr.msra.gmra.mrb[0].mxu0 %v1384_v49 }
 0x11d   : > { %728 = vmatpush1.bf16.msra.mxu1 %v727_v23 }
 0x11e   : > { %730 = vmatprep.subr.bf16.mxu1 %v729_v24 }
 0x121   : > { %732 = vmatpush1.bf16.msra.mxu1 %v731_v29 }
 0x122   : > { %734 = vmatprep.subr.bf16.mxu1 %v733_v30 }
 0x125   : > { %736 = vmatpush1.bf16.msra.mxu1 %v735_v33 }
 0x1ef   : > { %v398_v41 = vpop.f32.mrb[0].mxu0 }
 0x1f0   : > { %v399_v42 = vadd.f32 %v398_v41, %v325_v39  ;;  %v400_v43 = vpop.f32.mrb[1].mxu0 }
 0x1f1   : > { %v401_v44 = vadd.f32 %v400_v43, %v329_v40 }
 0x1f2   : > { %v663_v45 = vmul.f32 -1.442695, %v399_v42 }
 0x1f3   : > { %v664_v46 = vmul.f32 -1.442695, %v401_v44 }
 0x1f4   : > { %799 = vpow2.f32 %v663_v45 }
 0x1f5   : > { %801 = vpow2.f32 %v664_v46 }
 0x1fe   : > { %v800_v47 = vpop.eup %799 }
 0x1ff   : > { %v802_v48 = vpop.eup %801  ;;  %v409_v50 = vadd.f32 1.0, %v800_v47 }
 0x200   : > { %v410_v51 = vadd.f32 1.0, %v802_v48 }
 0x201   : > { %803 = vrcp.f32 %v409_v50 }
 0x202   : > { %805 = vrcp.f32 %v410_v51 }
 0x20b   : > { %v804_v52 = vpop.eup %803 }
 0x20c   : > { %v806_v53 = vpop.eup %805 }
 0x20d   : > { %v415_v54 = vmul.f32 %v806_v53, %v804_v52  ;;  %v416_v55 = vsub.f32 1.0, %v806_v53 }
 0x20f   : > { %v417_v56 = vmul.f32 %v416_v55, %v1384_v49 }
 0x211   : > { %v418_v57 = vadd.f32 %v417_v56, %v415_v54 }
 0x213   : > { %530 = vmatmul.mubr.f32.vlgmr.msra.gmra.mrb[0].mxu1 %v418_v57 }
 0x2e6   : > { %v531_v61 = vpop.f32.mrb[0].mxu1 }
 0x2e7   : > { %v532_v62 = vadd.f32 %v531_v61, %v458_v59  ;;  %v533_v63 = vpop.f32.mrb[1].mxu1 }
 0x2e8   : > { %v534_v0 = vadd.f32 %v533_v63, %v462_v60 }
 0x2e9   : > { %v666_v1 = vmul.f32 -1.442695, %v532_v62 }
 0x2ea   : > { %v667_v2 = vmul.f32 -1.442695, %v534_v0 }
 0x2eb   : > { %807 = vpow2.f32 %v666_v1 }
 0x2ec   : > { %809 = vpow2.f32 %v667_v2 }
 0x2f5   : > { %v808_v3 = vpop.eup %807 }
 0x2f6   : > { %v810_v49 = vpop.eup %809  ;;  %v542_v4 = vadd.f32 1.0, %v808_v3 }
 0x2f7   : > { %v543_v5 = vadd.f32 1.0, %v810_v49 }
 0x2f8   : > { %811 = vrcp.f32 %v542_v4 }
 0x2f9   : > { %813 = vrcp.f32 %v543_v5 }
 0x302   : > { %v812_v6 = vpop.eup %811 }
 0x303   : > { %v814_v7 = vpop.eup %813 }
 0x304   : > { %v548_v8 = vmul.f32 %v814_v7, %v812_v6  ;;  %v549_v9 = vsub.f32 1.0, %v814_v7 }
 0x306   : > { %v550_v10 = vmul.f32 %v549_v9, %v418_v57 }
 0x308   : > { %v551_v11 = vadd.f32 %v550_v10, %v548_v8 }
 0x30a   : > { %552 = vst [vmem:[%s142_s20] sm:$0xff] %v551_v11 }
 0x30b   : > { %1058 = shalt.err (!%p1055_p5)
}
 0x30c   : > { %s1059_s11 = scalar_lea.hbm %s1400_s12, 128  ;;  %s1063_s15 = scalar_lea.hbm %s1450_s4, 256 }
 0x30d   : > { %p1060_p6 = scmp.ne.s32.totalorder %s1400_s12, %s1059_s11  ;;  %p1064_p11 = scmp.lt.u32.totalorder %s1400_s12, %s1450_s4 }
 0x30e   : > { %p1065_p0 = scmp.lt.u32.totalorder %s1063_s15, %s1059_s11  ;;  %p1067_p4 = scmp.lt.u32.totalorder %s1059_s11, %s1400_s12 }
 0x30f   : > { %p1061_p7 = pnand %p1060_p6, %p1468_p3 }
 0x310   : > { %p1066_p2 = por %p1065_p0, %p1064_p11 }
 0x311   : > { %p1062_p10 = pneg %p1061_p7 }
 0x312   : > { %p1068_p8 = por %p1067_p4, %p1066_p2 }
 0x314   : > { %p1069_p9 = pnand %p1068_p8, %p1062_p10 }
 0x316   : > { %1072 = shalt.err (!%p1069_p9)
}
 0x317   : > { %741 = dma.vmem_to_hbm [thread:$0]  (%p1468_p3), %s1402_s19, 128, %s1400_s12, %s554_s6  }
 0x318 PF: > { %p753_p12 = scmp.ge.s32.totalorder %s1115_s28, 2  ;;  %s579_s20 = sand.u32 1, %s1103_s25  }
 0x319   : > { %p1469_p13 = scmp.ne.s32.totalorder %s1460_s9, 0  ;;  %s580_s5 = scalar_lea.sflag [#allocation8], %s579_s20 }
 0x31b   : > { %p748_p1 = pnand %p753_p12, %p1469_p13 }
 0x31d   : > { %1098 = dma.done.wait (!%p748_p1), %s580_s5, 128  }
 0x31e   : > { %1100 = vsyncadd (!%p748_p1), %s580_s5, 4294967168  ;;  %s1470_s13 = sld [smem:[#allocation32_spill]]  ;;  %s1471_s27 = sld [smem:[#allocation33_spill]] }
 0x31f   : > { %p19_p5 = scmp.ge.s32.totalorder %s1193_s30, 4   ;;  %s1472_s25 = smov %s1107_s26 }
 0x320   : > { %s1474_s28 = smov %s1193_s30 }
 0x321   :  { %21 = sbr.rel (!%p19_p5) target bundleno = 16 (0x10), region = 114 }
 0x324   : > { %s1473_s26 = smov %s1470_s13 }
 0x328   :  { %585 = vsyncpa [#allocation7], 1 }
 0x329   :  { %587 = vsyncpa [#allocation7 + $0x1], 1 }
 0x32a   :  { %588 = vsyncpa [#allocation8], 1 }
 0x32b   :  { %590 = vsyncpa [#allocation8 + $0x1], 1 }
 0x32c   :  { %591 = vsyncmov [#allocation3] }
 0x32f   :  { %s592_s28 = vpop.sfrf %591 }
 0x330   :  { %p672_p3 = scmp.ne.s32.totalorder %s592_s28, 0 }
 0x332   :  { %596 = shalt.err (%p672_p3)  }

</bundles_post_ra>
